<compile_context>
chip_gen: v7x
topology: tpu7x:2x2x1
jax: 0.10.0
libtpu: 0.0.40
codegen_flags: <defaults>
</compile_context>

<pallas_src>
import functools
import math

import jax
import jax.numpy as jnp
from jax import lax
from jax.experimental import pallas as pl
from jax.experimental.pallas import tpu as pltpu

_LANE = 128
_SUB_ROWS = 512                    # rows per in-kernel sub-chunk (f32 temps ~256 KiB)
_BLOCK_BYTES = 4 * 1024 * 1024     # combined streamed-input bytes per grid step
_VMEM_LIMIT = 32 * 1024 * 1024     # headroom; actual use <= ~10 MiB


def _round_up(v, m):
    return -(-v // m) * m


def _sum_log_kernel(*refs, margin, n_valid, tm, sub, n_inner, need_mask, weighted):
    """Accumulate sum((w *) log((1+margin) - clamp(x))) into an (8,128) f32 block."""
    if weighted:
        x_ref, w_ref, o_ref = refs
    else:
        x_ref, o_ref = refs
        w_ref = None

    outer = pl.program_id(0)
    inner = pl.program_id(1)

    @pl.when(inner == 0)
    def _():
        o_ref[...] = jnp.zeros_like(o_ref)

    block = outer * n_inner + inner          # logical block index
    row0 = block * tm                        # first logical row of this block
    one_plus_margin = jnp.float32(1.0 + margin)

    if need_mask:
        # Static bounds; iotas hoisted out of the inner loop (constant per block).
        rows_full = n_valid // _LANE         # number of fully-valid rows
        rem = n_valid % _LANE                # valid lanes in the partial row
        row_iota = lax.broadcasted_iota(jnp.int32, (sub, _LANE), 0)
        lane_iota = lax.broadcasted_iota(jnp.int32, (sub, _LANE), 1)

    n_sub = tm // sub

    def body(s, carry):
        r = pl.multiple_of(s * sub, sub)
        xv = jnp.clip(x_ref[pl.ds(r, sub), :].astype(jnp.float32), 0.0001, 0.9999)
        logs = jnp.log(one_plus_margin - xv)
        if weighted:
            logs = logs * w_ref[pl.ds(r, sub), :].astype(jnp.float32)
        if need_mask:
            grow = row_iota + (row0 + r)
            valid = grow < rows_full
            if rem:
                valid = valid | ((grow == rows_full) & (lane_iota < rem))
            logs = jnp.where(valid, logs, 0.0)
        # (sub,128) -> (sub//8, 8, 128): whole-vreg groups; the leading-axis sum
        # is pure VPU adds, no cross-lane XLU work in the hot loop.
        return carry + logs.reshape(sub // 8, 8, _LANE).sum(axis=0)

    part = lax.fori_loop(0, n_sub, body, jnp.zeros((8, _LANE), jnp.float32))
    o_ref[...] = o_ref[...] + part


def _choose_tiling(rows, itemsizes):
    """Pick (tm, sub, n_outer, n_inner) for the (rows, 128) slab."""
    bytes_per_row = _LANE * sum(int(s) for s in itemsizes)
    tm_cap = max(_SUB_ROWS,
                 (_BLOCK_BYTES // bytes_per_row) // _SUB_ROWS * _SUB_ROWS)
    if rows >= tm_cap:
        tm, sub = tm_cap, _SUB_ROWS
    else:
        sub = min(_SUB_ROWS, _round_up(rows, 8))
        tm = _round_up(rows, sub)
    assert tm % 8 == 0 and sub % 8 == 0 and tm % sub == 0, (tm, sub)
    n_blocks = -(-rows // tm)
    # Split the leading "parallel" axis whenever there are >= 2 blocks so both
    # v7x TensorCores get work (harmless serial loop on 1-TC v5e/v6e).
    if n_blocks >= 2:
        n_outer, n_inner = 2, -(-n_blocks // 2)
    else:
        n_outer, n_inner = 1, 1
    return tm, sub, n_outer, n_inner


def _sum_logs(x_flat, w_flat, margin):
    """sum over valid elements of (w *) log((1+margin) - clamp(x))."""
    n = int(x_flat.size)
    rows = -(-n // _LANE)

    def to2d(a):
        # Free reshape when n % 128 == 0 (common NN case); only the ragged case
        # pays a minimal pad-to-next-128 copy (<= 127 extra elements).
        pad = rows * _LANE - n
        if pad:
            a = jnp.pad(a, (0, pad))
        return a.reshape(rows, _LANE)

    itemsizes = [jnp.dtype(x_flat.dtype).itemsize]
    if w_flat is not None:
        itemsizes.append(jnp.dtype(w_flat.dtype).itemsize)

    tm, sub, n_outer, n_inner = _choose_tiling(rows, itemsizes)
    n_blocks = -(-rows // tm)
    covered = n_outer * n_inner * tm * _LANE
    need_mask = covered != n              # static: grid covers more than n elems

    operands = [to2d(x_flat)]
    if w_flat is not None:
        operands.append(to2d(w_flat))

    kernel = functools.partial(
        _sum_log_kernel, margin=margin, n_valid=n, tm=tm, sub=sub,
        n_inner=n_inner, need_mask=need_mask, weighted=w_flat is not None)

    def in_idx(o, i):
        # Clamp so a phantom last block (odd block count split over 2 outer
        # chunks) re-reads the last real block; its contribution is fully
        # masked in-kernel, and the repeated index means no extra DMA.
        return (jnp.minimum(o * n_inner + i, n_blocks - 1), 0)

    bytes_streamed = sum(rows * _LANE * s for s in itemsizes) \
        + n_outer * 8 * _LANE * 4

    partials = pl.pallas_call(
        kernel,
        out_shape=jax.ShapeDtypeStruct((n_outer * 8, _LANE), jnp.float32),
        grid_spec=pltpu.PrefetchScalarGridSpec(
            num_scalar_prefetch=0,
            grid=(n_outer, n_inner),
            in_specs=[pl.BlockSpec((tm, _LANE), in_idx) for _ in operands],
            out_specs=pl.BlockSpec((8, _LANE), lambda o, i: (o, 0)),
        ),
        compiler_params=pltpu.CompilerParams(
            dimension_semantics=("parallel", "arbitrary"),
            vmem_limit_bytes=_VMEM_LIMIT,
        ),
        cost_estimate=pl.CostEstimate(
            flops=6 * n, transcendentals=n, bytes_accessed=int(bytes_streamed)),
    )(*operands)
    return jnp.sum(partials, dtype=jnp.float32)


def sim_min_loss(x, weights=1.0, margin=0.0):
    """Pallas implementation of SimMinLoss.forward (scalar or tensor weights)."""
    margin = float(margin)
    x = jnp.asarray(x)
    w_shape = jnp.shape(weights)
    w_size = math.prod(w_shape) if w_shape else 1

    if w_size == 1:
        # Scalar (or all-singleton) weight: factor it out, stream only x.
        n = int(x.size)
        total = _sum_logs(x.reshape(-1), None, margin)
        wscalar = jnp.asarray(weights, jnp.float32).reshape(())
        return -(total * wscalar) / jnp.float32(n)

    # Tensor weights: the mean is over the broadcast shape.  When both operands
    # already have the broadcast shape nothing is materialized; otherwise only
    # the smaller operand is broadcast.
    # TODO(synk): stream partially-broadcasting weights (e.g. (1,C,1,1)) at
    # natural size via a repeated index_map instead of materializing them.
    w = jnp.asarray(weights)
    bshape = jnp.broadcast_shapes(x.shape, w.shape)
    n = math.prod(bshape)
    xb = x if x.shape == bshape else jnp.broadcast_to(x, bshape)
    wb = w if w.shape == bshape else jnp.broadcast_to(w, bshape)
    total = _sum_logs(xb.reshape(-1), wb.reshape(-1), margin)
    return -total / jnp.float32(n)


def sim_min_loss_ref(x, weights=1.0, margin=0.0):
    xc = jnp.clip(jnp.asarray(x, jnp.float32), 0.0001, 0.9999)
    return -jnp.mean(jnp.log(1.0 - xc + margin) * jnp.asarray(weights, jnp.float32))


if __name__ == "__main__":
    key = jax.random.PRNGKey(0)
    # SimMinLoss is applied to similarity maps in (0, 1); NCHW input.
    B, C, H, W = 2, 4, 16, 16
    x = jax.random.uniform(key, (B, C, H, W), dtype=jnp.float32)

    def check(got, ref):
        got = jax.block_until_ready(got)
        assert jnp.allclose(got, ref, rtol=1e-4, atol=1e-5), (got, ref)

    # Scalar-weight case (the common path; 128-aligned -> zero-copy, no mask).
    check(sim_min_loss(x, weights=1.0, margin=0.0),
          sim_min_loss_ref(x, weights=1.0, margin=0.0))

    # Non-128-divisible size: exercises the minimal pad + in-kernel masking.
    x2 = jax.random.uniform(jax.random.PRNGKey(1), (2, 3, 5, 7), dtype=jnp.float32)
    check(sim_min_loss(x2, weights=2.0, margin=0.1),
          sim_min_loss_ref(x2, weights=2.0, margin=0.1))

    # Full-shape per-element weight tensor (both streams at natural size).
    wts = jax.random.uniform(jax.random.PRNGKey(2), (B, C, H, W), dtype=jnp.float32)
    check(sim_min_loss(x, weights=wts, margin=0.0),
          sim_min_loss_ref(x, weights=wts, margin=0.0))

    # Broadcasting (1,C,1,1) weights: x streamed as-is, weights broadcast only.
    wch = jax.random.uniform(jax.random.PRNGKey(3), (1, C, 1, 1), dtype=jnp.float32)
    check(sim_min_loss(x, weights=wch, margin=0.05),
          sim_min_loss_ref(x, weights=wch, margin=0.05))

    # bf16 input streamed in its native dtype (cast to f32 inside the kernel).
    xb16 = jax.random.uniform(jax.random.PRNGKey(4), (B, C, H, W)).astype(jnp.bfloat16)
    check(sim_min_loss(xb16, weights=1.0, margin=0.0),
          sim_min_loss_ref(xb16, weights=1.0, margin=0.0))

    # Multi-sub-chunk tile with a masked row overhang (640 rows, sub=512).
    x3 = jax.random.uniform(jax.random.PRNGKey(5), (2, 4, 64, 160), dtype=jnp.float32)
    check(sim_min_loss(x3, weights=1.0, margin=0.0),
          sim_min_loss_ref(x3, weights=1.0, margin=0.0))

    print("KERNEL_OK")
</pallas_src>

<mosaic_0001>
module attributes {stable_mosaic.version = 11 : i64} {
  func.func @_sum_log_kernel(%arg0: i32, %arg1: i32, %arg2: memref<16x128xf32, #tpu.memory_space<vmem>>, %arg3: memref<8x128xf32, #tpu.memory_space<vmem>>) attributes {dimension_semantics = [#tpu.dimension_semantics<parallel>, #tpu.dimension_semantics<arbitrary>], iteration_bounds = array<i64: 1, 1>, scalar_prefetch = 0 : i64, scratch_operands = 0 : i64, tpu.core_type = #tpu.core_type<tc>, window_params = [{transform_indices = @transform_0, window_bounds = array<i64: 16, 128>}, {transform_indices = @transform_1, window_bounds = array<i64: 8, 128>}]} {
    %c0_i32 = arith.constant 0 : i32
    %0 = arith.cmpi eq, %arg1, %c0_i32 : i32
    %1 = arith.extui %0 : i1 to i32
    %c0_i32_0 = arith.constant 0 : i32
    %2 = arith.cmpi ne, %1, %c0_i32_0 : i32
    scf.if %2 {
      %cst_10 = arith.constant 0.000000e+00 : f32
      %21 = vector.broadcast %cst_10 : f32 to vector<8x128xf32>
      %c0_11 = arith.constant 0 : index
      %c0_12 = arith.constant 0 : index
      %22 = vector.load %arg3[%c0_11, %c0_12] : memref<8x128xf32, #tpu.memory_space<vmem>>, vector<8x128xf32>
      tpu.vector_store %arg3[%c0_11, %c0_12], %21 {strides = array<i32>} : memref<8x128xf32, #tpu.memory_space<vmem>>, vector<8x128xf32>,
    } else {
    }
    %cst = arith.constant 0.000000e+00 : f32
    %3 = vector.broadcast %cst : f32 to vector<8x128xf32>
    %cst_1 = arith.constant 1.000000e+00 : f32
    %c0_i32_2 = arith.constant 0 : i32
    %c16_i32 = arith.constant 16 : i32
    %4 = arith.muli %c0_i32_2, %c16_i32 : i32
    %5 = tpu.assume_multiple %4, 16 : i32
    %6 = arith.index_cast %5 : i32 to index
    %c0 = arith.constant 0 : index
    %7 = vector.load %arg2[%6, %c0] : memref<16x128xf32, #tpu.memory_space<vmem>>, vector<16x128xf32>
    %cst_3 = arith.constant 9.99999974E-5 : f32
    %cst_4 = arith.constant 0.999899983 : f32
    %8 = vector.broadcast %cst_3 : f32 to vector<16x128xf32>
    %9 = arith.maximumf %8, %7 : vector<16x128xf32>
    %10 = vector.broadcast %cst_4 : f32 to vector<16x128xf32>
    %11 = arith.minimumf %10, %9 : vector<16x128xf32>
    %12 = vector.broadcast %cst_1 : f32 to vector<16x128xf32>
    %13 = arith.subf %12, %11 : vector<16x128xf32>
    %14 = math.log %13 : vector<16x128xf32>
    %15 = vector.shape_cast %14 : vector<16x128xf32> to vector<2x8x128xf32>
    %cst_5 = arith.constant dense<0.000000e+00> : vector<8x128xf32>
    %16 = vector.multi_reduction <add>, %15, %cst_5 [0] : vector<2x8x128xf32> to vector<8x128xf32>
    %17 = arith.addf %3, %16 : vector<8x128xf32>
    %c1_i32 = arith.constant 1 : i32
    %c0_6 = arith.constant 0 : index
    %c0_7 = arith.constant 0 : index
    %18 = vector.load %arg3[%c0_6, %c0_7] : memref<8x128xf32, #tpu.memory_space<vmem>>, vector<8x128xf32>
    %19 = arith.addf %18, %17 : vector<8x128xf32>
    %c0_8 = arith.constant 0 : index
    %c0_9 = arith.constant 0 : index
    %20 = vector.load %arg3[%c0_8, %c0_9] : memref<8x128xf32, #tpu.memory_space<vmem>>, vector<8x128xf32>
    tpu.vector_store %arg3[%c0_8, %c0_9], %19 {strides = array<i32>} : memref<8x128xf32, #tpu.memory_space<vmem>>, vector<8x128xf32>,
    return
  }
  func.func @transform_0(%arg0: i32, %arg1: i32) -> (i32, i32) {
    %c1_i32 = arith.constant 1 : i32
    %0 = arith.muli %arg0, %c1_i32 : i32
    %1 = arith.addi %0, %arg1 : i32
    %c0_i32 = arith.constant 0 : i32
    %2 = arith.minsi %1, %c0_i32 : i32
    %c0_i32_0 = arith.constant 0 : i32
    %c0_i32_1 = arith.constant 0 : i32
    return %2, %c0_i32_0 : i32, i32
  }
  func.func @transform_1(%arg0: i32, %arg1: i32) -> (i32, i32) {
    %c0_i32 = arith.constant 0 : i32
    %c0_i32_0 = arith.constant 0 : i32
    return %arg0, %c0_i32 : i32, i32
  }
}

</mosaic_0001>

<bundles_post_ra>
// kernel: tpu_custom_call.1
= control target key start
LH: loop header
LB: loop body
LE: loop exit
PB: predicated region body
PF: predicated region fallthrough
CT: control target
= control target key end

     0   :  { %6 = vsyncpa [#allocation3], 0  ;;  %s167_s0 = inlined_call_operand.hbm [shape: f32[16,128], index: 0, kind: input, shape index: {}]   ;;  %s168_s1 = inlined_call_operand.hbm [shape: f32[8,128], index: 1, kind: output, shape index: {}]  }
   0x1   :  { %7 = vsyncpa [#allocation4], 0  ;;  %s129_s6 = smov [#allocation2]   ;;  %s81_s10 = scalar_lea.hbm %s167_s0, 256 }
   0x2   :  { %s19_s7 = sshll.u32 %s129_s6, 4  ;;  %p82_p0 = scmp.ne.s32.totalorder %s167_s0, %s81_s10  ;;  %s20_s7 = int_to_ptr.vmem [resolvable:$true] %s19_s7 }
   0x3   :  { %p85_p1 = scmp.lt.u32.totalorder %s81_s10, %s167_s0 }
   0x5   :  { %p87_p2 = pnand %p85_p1, %p82_p0 }
   0x7   :  { %90 = shalt.err (!%p87_p2)
}
   0x8   :  { %s91_s15 = scalar_lea.vmem %s20_s7, 256  ;;  %p96_p4 = scmp.lt.s32.totalorder %s20_s7, %s20_s7 }
   0x9   :  { %p92_p3 = scmp.ne.s32.totalorder %s20_s7, %s91_s15  ;;  %p97_p5 = scmp.lt.s32.totalorder %s91_s15, %s91_s15 }
   0xb   :  { %p98_p6 = por %p97_p5, %p96_p4 }
   0xd   :  { %p99_p7 = pnand %p98_p6, %p92_p3 }
   0xf   :  { %102 = shalt.err (!%p99_p7)
}
  0x10   :  { %s130_s16 = smov 128   ;;  %s131_s17 = smov 8  }
  0x11   :  { %25 = dma.hbm_to_vmem [thread:$0]  %s167_s0, 256, %s20_s7, [#allocation3], %s130_s16, %s130_s16, %s131_s17  }
  0x12   :  { %125 = dma.done.wait [#allocation3], 256  }
  0x13   :  { %126 = vsyncadd [#allocation3], 4294967040  ;;  %v38_v0 = vld [vmem:[#allocation2] sm:$0xff]  ;;  %v39_v1 = vld [vmem:[#allocation2 + $0x8] sm:$0xff]  ;;  %s132_s20 = smov [#allocation5]  }
  0x14   :  { %v40_v2 = vmax.f32 %v38_v0, 0.0001  ;;  %v41_v3 = vmax.f32 %v39_v1, 0.0001  ;;  %s61_s21 = sshll.u32 %s132_s20, 4  ;;  %s62_s21 = int_to_ptr.vmem [resolvable:$true] %s61_s21 }
  0x15   :  { %s103_s0 = scalar_lea.vmem %s62_s21, 128  ;;  %p108_p9 = scmp.lt.s32.totalorder %s62_s21, %s62_s21 }
  0x16   :  { %v42_v4 = vmin.f32 %v40_v2, 0.9999  ;;  %v43_v5 = vmin.f32 %v41_v3, 0.9999  ;;  %p104_p8 = scmp.ne.s32.totalorder %s62_s21, %s103_s0  ;;  %p109_p10 = scmp.lt.s32.totalorder %s103_s0, %s103_s0 }
  0x18   :  { %v44_v6 = vsub.f32 1.0, %v42_v4  ;;  %v45_v7 = vsub.f32 1.0, %v43_v5  ;;  %p110_p11 = por %p109_p10, %p108_p9 }
  0x1a   :  { %77 = vlog2.f32 %v44_v6  ;;  %p111_p12 = pnand %p110_p11, %p104_p8 }
  0x1b   :  { %79 = vlog2.f32 %v45_v7 }
  0x24   :  { %v78_v8 = vpop.eup %77 }
  0x25   :  { %v80_v9 = vpop.eup %79  ;;  %v47_v10 = vmul.f32 0.6931472, %v78_v8 }
  0x26   :  { %v49_v11 = vmul.f32 0.6931472, %v80_v9 }
  0x28   :  { %v50_v12 = vadd.f32 %v49_v11, %v47_v10 }
  0x2a   :  { %54 = vst [vmem:[#allocation5] sm:$0xff] %v50_v12 }
  0x2b   :  { %114 = shalt.err (!%p111_p12)
}
  0x2c   :  { %s115_s24 = scalar_lea.hbm %s168_s1, 128 }
  0x2d   :  { %p116_p13 = scmp.ne.s32.totalorder %s168_s1, %s115_s24  ;;  %p119_p0 = scmp.lt.u32.totalorder %s115_s24, %s168_s1 }
  0x2f   :  { %p121_p1 = pnand %p119_p0, %p116_p13 }
  0x31   :  { %124 = shalt.err (!%p121_p1)
}
  0x32   :  { %64 = dma.vmem_to_hbm [thread:$0]  %s62_s21, 128, %s168_s1, [#allocation4]  }
  0x33   :  { %127 = dma.done.wait [#allocation4], 128  }
  0x34   :  { %128 = vsyncadd [#allocation4], 4294967168 }
  0x35   :  { %68 = vsyncpa [#allocation3], 1 }
  0x36   :  { %69 = vsyncpa [#allocation4], 1 }

</bundles_post_ra>
